<compile_context>
chip_gen: v7x
topology: tpu7x:2x2x1
jax: 0.10.0
libtpu: 0.0.40
codegen_flags: <defaults>
</compile_context>

<pallas_src>
import functools

import jax
import jax.numpy as jnp
from jax.experimental import pallas as pl
from jax.experimental.pallas import tpu as pltpu

LANE = 128      # vreg lane width (last dim)
SUBLANE = 8     # f32 sublane width (second-to-last dim)


def _round_up(x, m):
    return ((x + m - 1) // m) * m


def _fused_mlp_kernel(x_ref, *refs, num_layers, compute_dtype):
    """One batch-tile of the whole MLP: refs = (w0, b0, ..., wL-1, bL-1, out_ref)."""
    out_ref = refs[-1]
    wb = refs[:-1]

    h = x_ref[...]  # (TB, Din_p) f32, stays on-chip for the whole stack
    for l in range(num_layers):
        w = wb[2 * l][...]
        b = wb[2 * l + 1][...]          # (1, Dout_p), broadcasts over batch
        y = jnp.dot(h.astype(compute_dtype), w.astype(compute_dtype),
                    preferred_element_type=jnp.float32)
        y = y + b
        if l < num_layers - 1:
            h = jnp.maximum(y, 0.0)     # ReLU; Dropout is identity in eval mode
        else:
            # sigmoid = 1 / (1 + exp(-y)); exp and reciprocal both run on the EUP slot.
            h = pl.reciprocal(1.0 + jnp.exp(-y), approx=True)
    out_ref[...] = h.astype(out_ref.dtype)


@functools.partial(jax.jit, static_argnames=("compute_dtype", "max_batch_tile"))
def mlp_forward(x, params, *, compute_dtype=jnp.float32, max_batch_tile=256):
    """Fused forward pass of MLPModel (inference; dropout = identity).

    x:      (B, Din) float32
    params: list of (w, b) with w: (din, dout), b: (1, dout)  [PyTorch weight transposed]
    Returns (B, 1) float32 probabilities.
    """
    B, Din = x.shape
    num_layers = len(params)

    in_dims = [Din] + [w.shape[1] for (w, _) in params[:-1]]
    out_dims = [w.shape[1] for (w, _) in params]
    in_p = [_round_up(d, LANE) for d in in_dims]
    out_p = [_round_up(d, LANE) for d in out_dims]

    # Batch tiling: TB multiple of 8, up to max_batch_tile; pad batch to a TB multiple.
    TB = min(max_batch_tile, _round_up(B, SUBLANE))
    B_p = _round_up(B, TB)

    # Zero-pad input and all weights/biases to lane-dense shapes (zeros are inert:
    # padded input cols hit zero weight rows; padded output cols are sliced off).
    x_p = jnp.zeros((B_p, in_p[0]), jnp.float32).at[:B, :Din].set(x)
    padded = []
    for l, (w, b) in enumerate(params):
        w_p = (jnp.zeros((in_p[l], out_p[l]), jnp.float32)
               .at[: w.shape[0], : w.shape[1]].set(w))
        b_p = (jnp.zeros((1, out_p[l]), jnp.float32)
               .at[:, : b.shape[-1]].set(b.reshape(1, -1)))
        padded += [w_p, b_p]

    grid = (B_p // TB,)

    in_specs = [pl.BlockSpec((TB, in_p[0]), lambda i: (i, 0))]
    for l in range(num_layers):
        # Full-extent weight/bias blocks, constant index_map -> stay VMEM-resident
        # across batch tiles (no re-DMA per tile).
        in_specs.append(pl.BlockSpec((in_p[l], out_p[l]), lambda i: (0, 0)))
        in_specs.append(pl.BlockSpec((1, out_p[l]), lambda i: (0, 0)))
    out_spec = pl.BlockSpec((TB, out_p[-1]), lambda i: (i, 0))

    itemsize = 4
    flops = sum(2 * B_p * in_p[l] * out_p[l] for l in range(num_layers))
    bytes_accessed = (
        x_p.size * itemsize
        + sum(a.size * itemsize for a in padded)
        + B_p * out_p[-1] * itemsize
    )
    cost = pl.CostEstimate(flops=flops,
                           transcendentals=B_p * out_p[-1],
                           bytes_accessed=bytes_accessed)

    kernel = functools.partial(_fused_mlp_kernel,
                               num_layers=num_layers,
                               compute_dtype=compute_dtype)

    out_padded = pl.pallas_call(
        kernel,
        out_shape=jax.ShapeDtypeStruct((B_p, out_p[-1]), jnp.float32),
        grid=grid,
        in_specs=in_specs,
        out_specs=out_spec,
        compiler_params=pltpu.CompilerParams(
            dimension_semantics=("parallel",),
        ),
        cost_estimate=cost,
    )(x_p, *padded)

    # Slice off batch padding and the lane padding of the final (B,1) output.
    return out_padded[:B, : out_dims[-1]]


def init_mlp_params(key, in_features, hidden_layers, units_per_layer):
    """Deterministic init mimicking PyTorch nn.Linear default (uniform +-1/sqrt(fan_in))."""
    params = []
    dims = [(in_features, units_per_layer)]
    dims += [(units_per_layer, units_per_layer)] * hidden_layers
    dims += [(units_per_layer, 1)]
    for (din, dout) in dims:
        key, kw, kb = jax.random.split(key, 3)
        bound = 1.0 / (din ** 0.5)
        w = jax.random.uniform(kw, (din, dout), jnp.float32, -bound, bound)
        b = jax.random.uniform(kb, (1, dout), jnp.float32, -bound, bound)
        params.append((w, b))
    return params


def predict(prob, threshold=0.5):
    # mirrors MLPModel.predict: (prob >= threshold).T.float()
    return (prob >= threshold).T.astype(jnp.float32)


if __name__ == "__main__":
    # Small shapes: batch=8, in_features=32, 2 hidden layers, 32 units/layer.
    in_features = 32
    hidden_layers = 2
    units_per_layer = 32
    batch = 8

    key = jax.random.PRNGKey(0)
    key, kx = jax.random.split(key)
    x = jax.random.normal(kx, (batch, in_features), jnp.float32)

    params = init_mlp_params(key, in_features, hidden_layers, units_per_layer)

    out = mlp_forward(x, params)
    out = jax.block_until_ready(out)

    assert out.shape == (batch, 1), out.shape
    assert bool(jnp.all((out >= 0.0) & (out <= 1.0)))

    # Pure-JAX reference check (tolerance allows the approx-reciprocal sigmoid).
    ref = x
    for (w, b) in params[:-1]:
        ref = jnp.maximum(ref @ w + b, 0.0)
    ref = jax.nn.sigmoid(ref @ params[-1][0] + params[-1][1])
    assert bool(jnp.allclose(out, ref, atol=2e-3, rtol=2e-3)), (
        float(jnp.max(jnp.abs(out - ref))))

    _ = predict(out)  # exercise threshold path

    print("KERNEL_OK")
</pallas_src>

<mosaic_0001>
module attributes {stable_mosaic.version = 11 : i64} {
  func.func @_fused_mlp_kernel(%arg0: i32, %arg1: memref<8x128xf32, #tpu.memory_space<vmem>>, %arg2: memref<128x128xf32, #tpu.memory_space<vmem>>, %arg3: memref<1x128xf32, #tpu.memory_space<vmem>>, %arg4: memref<128x128xf32, #tpu.memory_space<vmem>>, %arg5: memref<1x128xf32, #tpu.memory_space<vmem>>, %arg6: memref<128x128xf32, #tpu.memory_space<vmem>>, %arg7: memref<1x128xf32, #tpu.memory_space<vmem>>, %arg8: memref<128x128xf32, #tpu.memory_space<vmem>>, %arg9: memref<1x128xf32, #tpu.memory_space<vmem>>, %arg10: memref<8x128xf32, #tpu.memory_space<vmem>>) attributes {dimension_semantics = [#tpu.dimension_semantics<parallel>], iteration_bounds = array<i64: 1>, scalar_prefetch = 0 : i64, scratch_operands = 0 : i64, tpu.core_type = #tpu.core_type<tc>, window_params = [{transform_indices = @transform_0, window_bounds = array<i64: 8, 128>}, {pipeline_mode = #tpu.pipeline_mode<synchronous>, transform_indices = @transform_1, window_bounds = array<i64: 128, 128>}, {pipeline_mode = #tpu.pipeline_mode<synchronous>, transform_indices = @transform_2, window_bounds = array<i64: 1, 128>}, {pipeline_mode = #tpu.pipeline_mode<synchronous>, transform_indices = @transform_3, window_bounds = array<i64: 128, 128>}, {pipeline_mode = #tpu.pipeline_mode<synchronous>, transform_indices = @transform_4, window_bounds = array<i64: 1, 128>}, {pipeline_mode = #tpu.pipeline_mode<synchronous>, transform_indices = @transform_5, window_bounds = array<i64: 128, 128>}, {pipeline_mode = #tpu.pipeline_mode<synchronous>, transform_indices = @transform_6, window_bounds = array<i64: 1, 128>}, {pipeline_mode = #tpu.pipeline_mode<synchronous>, transform_indices = @transform_7, window_bounds = array<i64: 128, 128>}, {pipeline_mode = #tpu.pipeline_mode<synchronous>, transform_indices = @transform_8, window_bounds = array<i64: 1, 128>}, {transform_indices = @transform_9, window_bounds = array<i64: 8, 128>}]} {
    %c0 = arith.constant 0 : index
    %c0_0 = arith.constant 0 : index
    %0 = vector.load %arg1[%c0, %c0_0] : memref<8x128xf32, #tpu.memory_space<vmem>>, vector<8x128xf32>
    %c0_1 = arith.constant 0 : index
    %c0_2 = arith.constant 0 : index
    %1 = vector.load %arg2[%c0_1, %c0_2] : memref<128x128xf32, #tpu.memory_space<vmem>>, vector<128x128xf32>
    %c0_3 = arith.constant 0 : index
    %c0_4 = arith.constant 0 : index
    %2 = vector.load %arg3[%c0_3, %c0_4] : memref<1x128xf32, #tpu.memory_space<vmem>>, vector<1x128xf32>
    %cst = arith.constant dense<0.000000e+00> : vector<8x128xf32>
    %3 = tpu.matmul %0, %1, %cst {dimension_numbers = #tpu.dot_dimension_numbers<[1], [0], [0], [1], [0, 0, 1, 1], [], []>} : vector<8x128xf32>, vector<128x128xf32>, vector<8x128xf32> -> vector<8x128xf32>
    %4 = vector.broadcast %2 : vector<1x128xf32> to vector<8x128xf32>
    %5 = arith.addf %3, %4 : vector<8x128xf32>
    %cst_5 = arith.constant 0.000000e+00 : f32
    %6 = vector.broadcast %cst_5 : f32 to vector<8x128xf32>
    %7 = arith.maximumf %5, %6 : vector<8x128xf32>
    %c0_6 = arith.constant 0 : index
    %c0_7 = arith.constant 0 : index
    %8 = vector.load %arg4[%c0_6, %c0_7] : memref<128x128xf32, #tpu.memory_space<vmem>>, vector<128x128xf32>
    %c0_8 = arith.constant 0 : index
    %c0_9 = arith.constant 0 : index
    %9 = vector.load %arg5[%c0_8, %c0_9] : memref<1x128xf32, #tpu.memory_space<vmem>>, vector<1x128xf32>
    %cst_10 = arith.constant dense<0.000000e+00> : vector<8x128xf32>
    %10 = tpu.matmul %7, %8, %cst_10 {dimension_numbers = #tpu.dot_dimension_numbers<[1], [0], [0], [1], [0, 0, 1, 1], [], []>} : vector<8x128xf32>, vector<128x128xf32>, vector<8x128xf32> -> vector<8x128xf32>
    %11 = vector.broadcast %9 : vector<1x128xf32> to vector<8x128xf32>
    %12 = arith.addf %10, %11 : vector<8x128xf32>
    %cst_11 = arith.constant 0.000000e+00 : f32
    %13 = vector.broadcast %cst_11 : f32 to vector<8x128xf32>
    %14 = arith.maximumf %12, %13 : vector<8x128xf32>
    %c0_12 = arith.constant 0 : index
    %c0_13 = arith.constant 0 : index
    %15 = vector.load %arg6[%c0_12, %c0_13] : memref<128x128xf32, #tpu.memory_space<vmem>>, vector<128x128xf32>
    %c0_14 = arith.constant 0 : index
    %c0_15 = arith.constant 0 : index
    %16 = vector.load %arg7[%c0_14, %c0_15] : memref<1x128xf32, #tpu.memory_space<vmem>>, vector<1x128xf32>
    %cst_16 = arith.constant dense<0.000000e+00> : vector<8x128xf32>
    %17 = tpu.matmul %14, %15, %cst_16 {dimension_numbers = #tpu.dot_dimension_numbers<[1], [0], [0], [1], [0, 0, 1, 1], [], []>} : vector<8x128xf32>, vector<128x128xf32>, vector<8x128xf32> -> vector<8x128xf32>
    %18 = vector.broadcast %16 : vector<1x128xf32> to vector<8x128xf32>
    %19 = arith.addf %17, %18 : vector<8x128xf32>
    %cst_17 = arith.constant 0.000000e+00 : f32
    %20 = vector.broadcast %cst_17 : f32 to vector<8x128xf32>
    %21 = arith.maximumf %19, %20 : vector<8x128xf32>
    %c0_18 = arith.constant 0 : index
    %c0_19 = arith.constant 0 : index
    %22 = vector.load %arg8[%c0_18, %c0_19] : memref<128x128xf32, #tpu.memory_space<vmem>>, vector<128x128xf32>
    %c0_20 = arith.constant 0 : index
    %c0_21 = arith.constant 0 : index
    %23 = vector.load %arg9[%c0_20, %c0_21] : memref<1x128xf32, #tpu.memory_space<vmem>>, vector<1x128xf32>
    %cst_22 = arith.constant dense<0.000000e+00> : vector<8x128xf32>
    %24 = tpu.matmul %21, %22, %cst_22 {dimension_numbers = #tpu.dot_dimension_numbers<[1], [0], [0], [1], [0, 0, 1, 1], [], []>} : vector<8x128xf32>, vector<128x128xf32>, vector<8x128xf32> -> vector<8x128xf32>
    %25 = vector.broadcast %23 : vector<1x128xf32> to vector<8x128xf32>
    %26 = arith.addf %24, %25 : vector<8x128xf32>
    %cst_23 = arith.constant 0.000000e+00 : f32
    %27 = vector.broadcast %cst_23 : f32 to vector<8x128xf32>
    %28 = arith.subf %27, %26 : vector<8x128xf32>
    %29 = math.exp %28 : vector<8x128xf32>
    %cst_24 = arith.constant 1.000000e+00 : f32
    %30 = vector.broadcast %cst_24 : f32 to vector<8x128xf32>
    %31 = arith.addf %30, %29 : vector<8x128xf32>
    %32 = tpu.reciprocal %31 {approx = true} : vector<8x128xf32> -> vector<8x128xf32>
    %c0_25 = arith.constant 0 : index
    %c0_26 = arith.constant 0 : index
    %33 = vector.load %arg10[%c0_25, %c0_26] : memref<8x128xf32, #tpu.memory_space<vmem>>, vector<8x128xf32>
    tpu.vector_store %arg10[%c0_25, %c0_26], %32 {strides = array<i32>} : memref<8x128xf32, #tpu.memory_space<vmem>>, vector<8x128xf32>,
    return
  }
  func.func @transform_0(%arg0: i32) -> (i32, i32) {
    %c0_i32 = arith.constant 0 : i32
    %c0_i32_0 = arith.constant 0 : i32
    return %arg0, %c0_i32 : i32, i32
  }
  func.func @transform_1(%arg0: i32) -> (i32, i32) {
    %c0_i32 = arith.constant 0 : i32
    %c0_i32_0 = arith.constant 0 : i32
    %c0_i32_1 = arith.constant 0 : i32
    return %c0_i32, %c0_i32_0 : i32, i32
  }
  func.func @transform_2(%arg0: i32) -> (i32, i32) {
    %c0_i32 = arith.constant 0 : i32
    %c0_i32_0 = arith.constant 0 : i32
    %c0_i32_1 = arith.constant 0 : i32
    return %c0_i32, %c0_i32_0 : i32, i32
  }
  func.func @transform_3(%arg0: i32) -> (i32, i32) {
    %c0_i32 = arith.constant 0 : i32
    %c0_i32_0 = arith.constant 0 : i32
    %c0_i32_1 = arith.constant 0 : i32
    return %c0_i32, %c0_i32_0 : i32, i32
  }
  func.func @transform_4(%arg0: i32) -> (i32, i32) {
    %c0_i32 = arith.constant 0 : i32
    %c0_i32_0 = arith.constant 0 : i32
    %c0_i32_1 = arith.constant 0 : i32
    return %c0_i32, %c0_i32_0 : i32, i32
  }
  func.func @transform_5(%arg0: i32) -> (i32, i32) {
    %c0_i32 = arith.constant 0 : i32
    %c0_i32_0 = arith.constant 0 : i32
    %c0_i32_1 = arith.constant 0 : i32
    return %c0_i32, %c0_i32_0 : i32, i32
  }
  func.func @transform_6(%arg0: i32) -> (i32, i32) {
    %c0_i32 = arith.constant 0 : i32
    %c0_i32_0 = arith.constant 0 : i32
    %c0_i32_1 = arith.constant 0 : i32
    return %c0_i32, %c0_i32_0 : i32, i32
  }
  func.func @transform_7(%arg0: i32) -> (i32, i32) {
    %c0_i32 = arith.constant 0 : i32
    %c0_i32_0 = arith.constant 0 : i32
    %c0_i32_1 = arith.constant 0 : i32
    return %c0_i32, %c0_i32_0 : i32, i32
  }
  func.func @transform_8(%arg0: i32) -> (i32, i32) {
    %c0_i32 = arith.constant 0 : i32
    %c0_i32_0 = arith.constant 0 : i32
    %c0_i32_1 = arith.constant 0 : i32
    return %c0_i32, %c0_i32_0 : i32, i32
  }
  func.func @transform_9(%arg0: i32) -> (i32, i32) {
    %c0_i32 = arith.constant 0 : i32
    %c0_i32_0 = arith.constant 0 : i32
    return %arg0, %c0_i32 : i32, i32
  }
}

</mosaic_0001>

<bundles_post_ra>
// kernel: mlp_forward.1
= control target key start
LH: loop header
LB: loop body
LE: loop exit
PB: predicated region body
PF: predicated region fallthrough
CT: control target
= control target key end

     0   :  { %v733_v0 = vmov 0.0|0.0   ;;  %vm734_vm0 = vmmov 0   ;;  %v735_v4 = vmov 0.0   ;;  %s1036_s1 = inlined_call_operand.vmem [shape: f32[128,128], index: 1, kind: input, shape index: {}]   ;;  %s1037_s3 = inlined_call_operand.vmem [shape: f32[128,128], index: 3, kind: input, shape index: {}]   ;;  %s1038_s0 = inlined_call_operand.vmem [shape: f32[8,128], index: 0, kind: input, shape index: {}]   ;;  %s1039_s5 = inlined_call_operand.vmem [shape: f32[128,128], index: 5, kind: input, shape index: {}]   ;;  %s1040_s2 = inlined_call_operand.vmem [shape: f32[1,128], index: 2, kind: input, shape index: {}]   ;;  %s1041_s7 = inlined_call_operand.vmem [shape: f32[128,128], index: 7, kind: input, shape index: {}]   ;;  %s1042_s4 = inlined_call_operand.vmem [shape: f32[1,128], index: 4, kind: input, shape index: {}]   ;;  %s1043_s6 = inlined_call_operand.vmem [shape: f32[1,128], index: 6, kind: input, shape index: {}]   ;;  %s1044_s8 = inlined_call_operand.vmem [shape: f32[1,128], index: 8, kind: input, shape index: {}]   ;;  %s1045_s9 = inlined_call_operand.vmem [shape: f32[8,128], index: 9, kind: output, shape index: {}]  }
   0x1   :  { %630 = vmatprep.subr.bf16.mxu0 %v733_v0  ;;  %v33_v1 = vld [vmem:[%s1036_s1] sm:$0xff]  ;;  %v34_v2 = vld [vmem:[%s1036_s1 + $0x8] sm:$0xff]  ;;  %v35_v3 = vld [vmem:[%s1036_s1 + $0x10] sm:$0xff]  ;;  %522 = vmatprep.mubr.msk.f32.mxu0 %vm734_vm0, %v735_v4 }
   0x2   :  { %v631_v5 = vpack.c.bf16 %v34_v2, %v33_v1  ;;  %v36_v6 = vld [vmem:[%s1036_s1 + $0x18] sm:$0xff]  ;;  %654 = vmatprep.subr.bf16.mxu1 %v733_v0  ;;  %557 = vmatprep.mubr.msk.f32.mxu1 %vm734_vm0, %v735_v4  ;;  %v37_v8 = vld [vmem:[%s1036_s1 + $0x20] sm:$0xff]  ;;  %v38_v9 = vld [vmem:[%s1036_s1 + $0x28] sm:$0xff] }
   0x3   :  { %v634_v7 = vpack.c.bf16 %v36_v6, %v35_v3  ;;  %v127_v10 = vld [vmem:[%s1037_s3] sm:$0xff]  ;;  %v128_v11 = vld [vmem:[%s1037_s3 + $0x8] sm:$0xff]  ;;  %v129_v12 = vld [vmem:[%s1037_s3 + $0x10] sm:$0xff]  ;;  %v637_v14 = vpack.c.bf16 %v38_v9, %v37_v8 }
   0x4   :  { %632 = vmatpush3.bf16.msra.mxu0 %v631_v5  ;;  %v130_v13 = vld [vmem:[%s1037_s3 + $0x18] sm:$0xff]  ;;  %v655_v15 = vpack.c.bf16 %v128_v11, %v127_v10  ;;  %v39_v16 = vld [vmem:[%s1036_s1 + $0x30] sm:$0xff]  ;;  %v131_v19 = vld [vmem:[%s1037_s3 + $0x20] sm:$0xff] }
   0x5   :  { %633 = vmatprep.subr.bf16.mxu0 %v733_v0  ;;  %v40_v17 = vld [vmem:[%s1036_s1 + $0x38] sm:$0xff]  ;;  %v658_v18 = vpack.c.bf16 %v130_v13, %v129_v12  ;;  %v132_v20 = vld [vmem:[%s1037_s3 + $0x28] sm:$0xff]  ;;  %v41_v22 = vld [vmem:[%s1036_s1 + $0x40] sm:$0xff] }
   0x6   :  { %656 = vmatpush3.bf16.msra.mxu1 %v655_v15  ;;  %v640_v21 = vpack.c.bf16 %v40_v17, %v39_v16  ;;  %v42_v23 = vld [vmem:[%s1036_s1 + $0x48] sm:$0xff]  ;;  %v661_v24 = vpack.c.bf16 %v132_v20, %v131_v19  ;;  %v133_v25 = vld [vmem:[%s1037_s3 + $0x30] sm:$0xff]  ;;  %v134_v26 = vld [vmem:[%s1037_s3 + $0x38] sm:$0xff] }
   0x7   :  { %657 = vmatprep.subr.bf16.mxu1 %v733_v0  ;;  %v643_v27 = vpack.c.bf16 %v42_v23, %v41_v22  ;;  %v43_v28 = vld [vmem:[%s1036_s1 + $0x50] sm:$0xff]  ;;  %v44_v29 = vld [vmem:[%s1036_s1 + $0x58] sm:$0xff]  ;;  %v664_v30 = vpack.c.bf16 %v134_v26, %v133_v25  ;;  %v135_v31 = vld [vmem:[%s1037_s3 + $0x40] sm:$0xff] }
   0x8   :  { %635 = vmatpush3.bf16.msra.mxu0 %v634_v7  ;;  %v136_v32 = vld [vmem:[%s1037_s3 + $0x48] sm:$0xff]  ;;  %v646_v33 = vpack.c.bf16 %v44_v29, %v43_v28  ;;  %v45_v34 = vld [vmem:[%s1036_s1 + $0x60] sm:$0xff]  ;;  %v137_v37 = vld [vmem:[%s1037_s3 + $0x50] sm:$0xff] }
   0x9   :  { %636 = vmatprep.subr.bf16.mxu0 %v733_v0  ;;  %v46_v35 = vld [vmem:[%s1036_s1 + $0x68] sm:$0xff]  ;;  %v667_v36 = vpack.c.bf16 %v136_v32, %v135_v31  ;;  %v138_v38 = vld [vmem:[%s1037_s3 + $0x58] sm:$0xff]  ;;  %v47_v40 = vld [vmem:[%s1036_s1 + $0x70] sm:$0xff] }
   0xa   :  { %659 = vmatpush3.bf16.msra.mxu1 %v658_v18  ;;  %v649_v39 = vpack.c.bf16 %v46_v35, %v45_v34  ;;  %v48_v41 = vld [vmem:[%s1036_s1 + $0x78] sm:$0xff]  ;;  %v670_v42 = vpack.c.bf16 %v138_v38, %v137_v37  ;;  %v139_v43 = vld [vmem:[%s1037_s3 + $0x60] sm:$0xff]  ;;  %v140_v44 = vld [vmem:[%s1037_s3 + $0x68] sm:$0xff] }
   0xb   :  { %660 = vmatprep.subr.bf16.mxu1 %v733_v0  ;;  %v652_v45 = vpack.c.bf16 %v48_v41, %v47_v40  ;;  %v673_v46 = vpack.c.bf16 %v140_v44, %v139_v43  ;;  %v32_v47 = vld [vmem:[%s1038_s0] sm:$0xff]  ;;  %v141_v48 = vld [vmem:[%s1037_s3 + $0x70] sm:$0xff]  ;;  %v142_v49 = vld [vmem:[%s1037_s3 + $0x78] sm:$0xff] }
   0xc   :  { %638 = vmatpush3.bf16.msra.mxu0 %v637_v14  ;;  %v676_v50 = vpack.c.bf16 %v142_v49, %v141_v48  ;;  %v221_v51 = vld [vmem:[%s1039_s5] sm:$0xff]  ;;  %v222_v52 = vld [vmem:[%s1039_s5 + $0x8] sm:$0xff]  ;;  %v223_v53 = vld [vmem:[%s1039_s5 + $0x10] sm:$0xff] }
   0xd   :  { %639 = vmatprep.subr.bf16.mxu0 %v733_v0  ;;  %v679_v54 = vpack.c.bf16 %v222_v52, %v221_v51  ;;  %v224_v55 = vld [vmem:[%s1039_s5 + $0x18] sm:$0xff]  ;;  %v225_v57 = vld [vmem:[%s1039_s5 + $0x20] sm:$0xff]  ;;  %v226_v58 = vld [vmem:[%s1039_s5 + $0x28] sm:$0xff] }
   0xe   :  { %662 = vmatpush3.bf16.msra.mxu1 %v661_v24  ;;  %v682_v56 = vpack.c.bf16 %v224_v55, %v223_v53  ;;  %v685_v59 = vpack.c.bf16 %v226_v58, %v225_v57  ;;  %v227_v60 = vld [vmem:[%s1039_s5 + $0x30] sm:$0xff]  ;;  %v228_v61 = vld [vmem:[%s1039_s5 + $0x38] sm:$0xff]  ;;  %v229_v63 = vld [vmem:[%s1039_s5 + $0x40] sm:$0xff] }
   0xf   :  { %663 = vmatprep.subr.bf16.mxu1 %v733_v0  ;;  %v688_v62 = vpack.c.bf16 %v228_v61, %v227_v60  ;;  %v230_v1 = vld [vmem:[%s1039_s5 + $0x48] sm:$0xff]  ;;  %v231_v3 = vld [vmem:[%s1039_s5 + $0x50] sm:$0xff]  ;;  %v232_v5 = vld [vmem:[%s1039_s5 + $0x58] sm:$0xff] }
  0x10   :  { %641 = vmatpush3.bf16.msra.mxu0 %v640_v21  ;;  %v691_v2 = vpack.c.bf16 %v230_v1, %v229_v63  ;;  %v694_v6 = vpack.c.bf16 %v232_v5, %v231_v3  ;;  %v233_v7 = vld [vmem:[%s1039_s5 + $0x60] sm:$0xff]  ;;  %v234_v8 = vld [vmem:[%s1039_s5 + $0x68] sm:$0xff]  ;;  %v235_v15 = vld [vmem:[%s1039_s5 + $0x70] sm:$0xff] }
  0x11   :  { %642 = vmatprep.subr.bf16.mxu0 %v733_v0  ;;  %v697_v9 = vpack.c.bf16 %v234_v8, %v233_v7  ;;  %v418_v10 = vld [vmem:[%s1040_s2] ss:$0 sm:$0xff]  ;;  %v236_v16 = vld [vmem:[%s1039_s5 + $0x78] sm:$0xff]  ;;  %v316_v19 = vld [vmem:[%s1041_s7 + $0x8] sm:$0xff] }
  0x12   :  { %665 = vmatpush3.bf16.msra.mxu1 %v664_v30  ;;  %v700_v17 = vpack.c.bf16 %v236_v16, %v235_v15  ;;  %v315_v18 = vld [vmem:[%s1041_s7] sm:$0xff]  ;;  %v318_v21 = vld [vmem:[%s1041_s7 + $0x18] sm:$0xff]  ;;  %v320_v24 = vld [vmem:[%s1041_s7 + $0x28] sm:$0xff] }
  0x13   :  { %666 = vmatprep.subr.bf16.mxu1 %v733_v0  ;;  %v703_v20 = vpack.c.bf16 %v316_v19, %v315_v18  ;;  %v319_v23 = vld [vmem:[%s1041_s7 + $0x20] sm:$0xff]  ;;  %v321_v26 = vld [vmem:[%s1041_s7 + $0x30] sm:$0xff]  ;;  %v324_v30 = vld [vmem:[%s1041_s7 + $0x48] sm:$0xff] }
  0x14   :  { %644 = vmatpush3.bf16.msra.mxu0 %v643_v27  ;;  %v709_v25 = vpack.c.bf16 %v320_v24, %v319_v23  ;;  %v322_v27 = vld [vmem:[%s1041_s7 + $0x38] sm:$0xff]  ;;  %v323_v29 = vld [vmem:[%s1041_s7 + $0x40] sm:$0xff]  ;;  %v325_v32 = vld [vmem:[%s1041_s7 + $0x50] sm:$0xff] }
  0x15   :  { %645 = vmatprep.subr.bf16.mxu0 %v733_v0  ;;  %v712_v28 = vpack.c.bf16 %v322_v27, %v321_v26  ;;  %v715_v31 = vpack.c.bf16 %v324_v30, %v323_v29  ;;  %v327_v35 = vld [vmem:[%s1041_s7 + $0x60] sm:$0xff]  ;;  %v329_v43 = vld [vmem:[%s1041_s7 + $0x70] sm:$0xff]  ;;  %v330_v44 = vld [vmem:[%s1041_s7 + $0x78] sm:$0xff] }
  0x16   :  { %668 = vmatpush3.bf16.msra.mxu1 %v667_v36  ;;  %v328_v36 = vld [vmem:[%s1041_s7 + $0x68] sm:$0xff]  ;;  %v419_v38 = vld [vmem:[%s1042_s4] ss:$0 sm:$0xff] }
  0x17   :  { %669 = vmatprep.subr.bf16.mxu1 %v733_v0  ;;  %v721_v37 = vpack.c.bf16 %v328_v36, %v327_v35 }
  0x18   :  { %647 = vmatpush3.bf16.msra.mxu0 %v646_v33  ;;  %v326_v33 = vld [vmem:[%s1041_s7 + $0x58] sm:$0xff] }
  0x19   :  { %648 = vmatprep.subr.bf16.mxu0 %v733_v0  ;;  %v718_v34 = vpack.c.bf16 %v326_v33, %v325_v32 }
  0x1a   :  { %671 = vmatpush3.bf16.msra.mxu1 %v670_v42 }
  0x1b   :  { %672 = vmatprep.subr.bf16.mxu1 %v733_v0 }
  0x1c   :  { %650 = vmatpush3.bf16.msra.mxu0 %v649_v39 }
  0x1d   :  { %651 = vmatprep.subr.bf16.mxu0 %v733_v0 }
  0x1e   :  { %674 = vmatpush3.bf16.msra.mxu1 %v673_v46 }
  0x1f   :  { %675 = vmatprep.subr.bf16.mxu1 %v733_v0 }
  0x20   :  { %653 = vmatpush3.bf16.msra.mxu0 %v652_v45  ;;  %v724_v45 = vpack.c.bf16 %v330_v44, %v329_v43 }
  0x21   :  { %678 = vmatprep.subr.bf16.mxu0 %v733_v0 }
  0x22   :  { %677 = vmatpush3.bf16.msra.mxu1 %v676_v50  ;;  %v421_v50 = vld [vmem:[%s1044_s8] ss:$0 sm:$0xff] }
  0x23   :  { %523 = vmatmul.mubr.f32.vlgmr.msra.gmra.mrb[0].mxu0 %v32_v47  ;;  %702 = vmatprep.subr.bf16.mxu1 %v733_v0 }
  0x24   :  { %592 = vmatprep.mubr.msk.f32.mxu0 %vm734_vm0, %v735_v4  ;;  %680 = vmatpush3.bf16.msra.mxu0 %v679_v54 }
  0x25   :  { %681 = vmatprep.subr.bf16.mxu0 %v733_v0 }
  0x28   :  { %683 = vmatpush3.bf16.msra.mxu0 %v682_v56 }
  0x29   :  { %684 = vmatprep.subr.bf16.mxu0 %v733_v0 }
  0x2c   :  { %686 = vmatpush3.bf16.msra.mxu0 %v685_v59 }
  0x2d   :  { %687 = vmatprep.subr.bf16.mxu0 %v733_v0 }
  0x30   :  { %689 = vmatpush3.bf16.msra.mxu0 %v688_v62 }
  0x31   :  { %690 = vmatprep.subr.bf16.mxu0 %v733_v0 }
  0x34   :  { %692 = vmatpush3.bf16.msra.mxu0 %v691_v2 }
  0x35   :  { %693 = vmatprep.subr.bf16.mxu0 %v733_v0 }
  0x38   :  { %695 = vmatpush3.bf16.msra.mxu0 %v694_v6 }
  0x39   :  { %696 = vmatprep.subr.bf16.mxu0 %v733_v0 }
  0x3c   :  { %698 = vmatpush3.bf16.msra.mxu0 %v697_v9 }
  0x3d   :  { %699 = vmatprep.subr.bf16.mxu0 %v733_v0 }
  0x40   :  { %701 = vmatpush3.bf16.msra.mxu0 %v700_v17 }
  0xf6   :  { %v122_v11 = vpop.f32.mrb[0].mxu0 }
  0xf7   :  { %v123_v12 = vadd.f32 %v418_v10, %v122_v11  ;;  %v524_v13 = vpop.f32.mrb[1].mxu0 }
  0xf9   :  { %v126_v14 = vmax.f32 %v123_v12, 0.0 }
  0xfb   :  { %558 = vmatmul.mubr.f32.vlgmr.msra.gmra.mrb[0].mxu1 %v126_v14 }
  0xfc   :  { %627 = vmatprep.mubr.msk.f32.mxu1 %vm734_vm0, %v735_v4  ;;  %v317_v4 = vld [vmem:[%s1041_s7 + $0x10] sm:$0xff]  ;;  %704 = vmatpush3.bf16.msra.mxu1 %v703_v20 }
  0xfd   :  { %v706_v22 = vpack.c.bf16 %v318_v21, %v317_v4  ;;  %705 = vmatprep.subr.bf16.mxu1 %v733_v0 }
 0x100   :  { %707 = vmatpush3.bf16.msra.mxu1 %v706_v22 }
 0x101   :  { %708 = vmatprep.subr.bf16.mxu1 %v733_v0 }
 0x104   :  { %710 = vmatpush3.bf16.msra.mxu1 %v709_v25 }
 0x105   :  { %711 = vmatprep.subr.bf16.mxu1 %v733_v0 }
 0x108   :  { %713 = vmatpush3.bf16.msra.mxu1 %v712_v28 }
 0x109   :  { %714 = vmatprep.subr.bf16.mxu1 %v733_v0 }
 0x10c   :  { %716 = vmatpush3.bf16.msra.mxu1 %v715_v31 }
 0x10d   :  { %717 = vmatprep.subr.bf16.mxu1 %v733_v0 }
 0x110   :  { %719 = vmatpush3.bf16.msra.mxu1 %v718_v34 }
 0x111   :  { %720 = vmatprep.subr.bf16.mxu1 %v733_v0 }
 0x114   :  { %722 = vmatpush3.bf16.msra.mxu1 %v721_v37 }
 0x115   :  { %723 = vmatprep.subr.bf16.mxu1 %v733_v0  ;;  %v420_v0 = vld [vmem:[%s1043_s6] ss:$0 sm:$0xff] }
 0x118   :  { %725 = vmatpush3.bf16.msra.mxu1 %v724_v45 }
 0x1ce   :  { %v216_v39 = vpop.f32.mrb[0].mxu1 }
 0x1cf   :  { %v217_v40 = vadd.f32 %v419_v38, %v216_v39  ;;  %v559_v41 = vpop.f32.mrb[1].mxu1 }
 0x1d1   :  { %v220_v42 = vmax.f32 %v217_v40, 0.0 }
 0x1d3   :  { %593 = vmatmul.mubr.f32.vlgmr.msra.gmra.mrb[2].mxu0 %v220_v42 }
 0x2a6   :  { %v310_v46 = vpop.f32.mrb[2].mxu0 }
 0x2a7   :  { %v311_v47 = vadd.f32 %v420_v0, %v310_v46  ;;  %v594_v48 = vpop.f32.mrb[3].mxu0 }
 0x2a9   :  { %v314_v49 = vmax.f32 %v311_v47, 0.0 }
 0x2ab   :  { %628 = vmatmul.mubr.f32.vlgmr.msra.gmra.mrb[2].mxu1 %v314_v49 }
 0x37e   :  { %v404_v51 = vpop.f32.mrb[2].mxu1 }
 0x37f   :  { %v405_v52 = vadd.f32 %v421_v50, %v404_v51  ;;  %v629_v53 = vpop.f32.mrb[3].mxu1 }
 0x381   :  { %v408_v54 = vsub.f32 0.0, %v405_v52 }
 0x383   :  { %v409_v55 = vmul.f32 1.442695, %v408_v54 }
 0x385   :  { %729 = vpow2.f32 %v409_v55 }
 0x38f   :  { %v730_v56 = vpop.eup %729 }
 0x390   :  { %v411_v57 = vadd.f32 1.0, %v730_v56 }
 0x392   :  { %731 = vrcp.f32 %v411_v57 }
 0x39c   :  { %v732_v58 = vpop.eup %731 }
 0x39d   :  { %413 = vst [vmem:[%s1045_s9] sm:$0xff] %v732_v58 }

</bundles_post_ra>
